<compile_context>
chip_gen: v5e
topology: v5e:2x2
jax: 0.10.0
libtpu: 0.0.40
codegen_flags: <defaults>
</compile_context>

<pallas_src>
import jax
import jax.numpy as jnp
from jax.experimental import pallas as pl
from jax.experimental.pallas import tpu as pltpu


# ---------------------------------------------------------------------------
# Fast path: NCHW -> NHWC  (dims == (0, 2, 3, 1)), lane-dense merged output.
# ---------------------------------------------------------------------------

def _nchw_to_nhwc_kernel(x_ref, o_ref):
    """x_ref: (1, C, TH, W) VMEM tile  ->  o_ref: (1, TH, W*C) lane-dense tile."""
    x = x_ref[...]                          # (1, C, TH, W)
    _, c, th, w = x.shape
    # TODO(synk): pltpu.einshape("bchw->bh(wc)") could express this shuffle as
    # one layout op; transpose+reshape is the portable equivalent and lowers
    # to XLU shuffles in VMEM (XLU slot, off the VALU critical path).
    y = jnp.transpose(x, (0, 2, 3, 1))      # (1, TH, W, C)
    o_ref[...] = y.reshape(1, th, w * c)    # store with last dim = W*C (unmasked)


def _choose_tile_h(b, c, h, w, itemsize,
                   target_bytes=2 * 1024 * 1024, min_steps=4):
    """Pick TH: divides H, multiple of 8 (or H itself), tile <= ~2 MiB,
    preferring enough grid steps to pipeline DMA / feed both TensorCores."""
    cands = [th for th in range(8, h + 1, 8) if h % th == 0]
    if h not in cands:
        cands.append(h)                     # TH == H (full extent) is always legal.
    fitting = [th for th in cands if c * th * w * itemsize <= target_bytes]
    if not fitting:
        fitting = [min(cands)]              # can't fit target: take smallest legal.
    enough = [th for th in fitting if b * (h // th) >= min_steps]
    return max(enough) if enough else max(fitting)


def _permute_nchw_to_nhwc(x):
    b, c, h, w = x.shape
    itemsize = x.dtype.itemsize
    th = _choose_tile_h(b, c, h, w, itemsize)
    merged = w * c
    nbytes = x.size * itemsize

    # Per-step VMEM: (input tile + output tile) x double buffering, plus slack
    # for the in-kernel transpose temporaries. Only override the scoped VMEM
    # limit when the default (~32 MiB) would be too tight.
    tile_bytes = c * th * w * itemsize
    vmem_need = 4 * tile_bytes * 2 + (1 << 20)
    compiler_params = pltpu.CompilerParams(
        dimension_semantics=("parallel", "parallel"),
        vmem_limit_bytes=(min(vmem_need, 100 << 20)
                          if vmem_need > (28 << 20) else None),
    )

    out = pl.pallas_call(
        _nchw_to_nhwc_kernel,
        out_shape=jax.ShapeDtypeStruct((b, h, merged), x.dtype),
        grid_spec=pl.GridSpec(
            grid=(b, h // th),
            in_specs=[pl.BlockSpec((1, c, th, w), lambda i, j: (i, 0, j, 0))],
            out_specs=pl.BlockSpec((1, th, merged), lambda i, j: (i, j, 0)),
        ),
        compiler_params=compiler_params,
        cost_estimate=pl.CostEstimate(
            flops=0, transcendentals=0, bytes_accessed=2 * nbytes),
    )(x)
    # Free reshape: (B, H, W*C) and (B, H, W, C) are the same contiguous bytes.
    return out.reshape(b, h, w, c)


# ---------------------------------------------------------------------------
# Generic fallback for arbitrary permutations (single full-array block).
# ---------------------------------------------------------------------------

def _permute_generic(x, dims):
    out_shape = tuple(x.shape[d] for d in dims)
    nbytes = x.size * x.dtype.itemsize

    def kernel(x_ref, o_ref):
        o_ref[...] = jnp.transpose(x_ref[...], dims)

    # Full-extent blocks always satisfy the (8,128)/full-extent rule; no grid
    # means a single step. Suitable for small/medium tensors only.
    # TODO(synk): large tensors with non-NCHW->NHWC dims would need a tiled,
    # lane-dense variant like the fast path above.
    return pl.pallas_call(
        kernel,
        out_shape=jax.ShapeDtypeStruct(out_shape, x.dtype),
        cost_estimate=pl.CostEstimate(
            flops=0, transcendentals=0, bytes_accessed=2 * nbytes),
    )(x)


# ---------------------------------------------------------------------------
# Public entry point (mirrors Permute(*dims).forward).
# ---------------------------------------------------------------------------

def pallas_permute(x, dims):
    dims = tuple(int(d) for d in dims)
    if sorted(dims) != list(range(x.ndim)):
        raise ValueError("dims must be a permutation of range(x.ndim)")
    if dims == tuple(range(x.ndim)):
        return x                                      # identity permutation
    if x.ndim == 4 and dims == (0, 2, 3, 1):
        return _permute_nchw_to_nhwc(x)               # optimized NCHW->NHWC path
    return _permute_generic(x, dims)


if __name__ == "__main__":
    # Module instance equivalent: Permute(0, 2, 3, 1)  (NCHW -> NHWC)
    dims = (0, 2, 3, 1)

    key = jax.random.PRNGKey(0)
    x = jax.random.normal(key, (2, 4, 16, 16), dtype=jnp.float32)  # NCHW

    out = jax.block_until_ready(pallas_permute(x, dims))
    ref = jnp.transpose(x, dims)
    assert out.shape == ref.shape == (2, 16, 16, 4)
    assert out.dtype == x.dtype
    assert jnp.array_equal(out, ref)

    # Exercise the generic fallback path on a leading-axis permutation.
    out2 = jax.block_until_ready(pallas_permute(x, (1, 0, 2, 3)))
    assert jnp.array_equal(out2, jnp.transpose(x, (1, 0, 2, 3)))

    print("KERNEL_OK")
</pallas_src>

<mosaic_0001>
module attributes {stable_mosaic.version = 11 : i64} {
  func.func @_nchw_to_nhwc_kernel(%arg0: i32, %arg1: i32, %arg2: memref<1x4x8x16xf32, #tpu.memory_space<vmem>>, %arg3: memref<1x8x64xf32, #tpu.memory_space<vmem>>) attributes {dimension_semantics = [#tpu.dimension_semantics<parallel>, #tpu.dimension_semantics<parallel>], iteration_bounds = array<i64: 2, 2>, scalar_prefetch = 0 : i64, scratch_operands = 0 : i64, tpu.core_type = #tpu.core_type<tc>, window_params = [{transform_indices = @transform_0, window_bounds = array<i64: 1, 4, 8, 16>}, {transform_indices = @transform_1, window_bounds = array<i64: 1, 8, 64>}]} {
    %c0 = arith.constant 0 : index
    %c0_0 = arith.constant 0 : index
    %c0_1 = arith.constant 0 : index
    %c0_2 = arith.constant 0 : index
    %0 = vector.load %arg2[%c0, %c0_0, %c0_1, %c0_2] : memref<1x4x8x16xf32, #tpu.memory_space<vmem>>, vector<1x4x8x16xf32>
    %1 = tpu.transpose %0, [0, 2, 3, 1] : vector<1x4x8x16xf32> -> vector<1x8x16x4xf32>
    %2 = vector.shape_cast %1 : vector<1x8x16x4xf32> to vector<1x8x64xf32>
    %c0_3 = arith.constant 0 : index
    %c0_4 = arith.constant 0 : index
    %c0_5 = arith.constant 0 : index
    %3 = vector.load %arg3[%c0_3, %c0_4, %c0_5] : memref<1x8x64xf32, #tpu.memory_space<vmem>>, vector<1x8x64xf32>
    tpu.vector_store %arg3[%c0_3, %c0_4, %c0_5], %2 {strides = array<i32>} : memref<1x8x64xf32, #tpu.memory_space<vmem>>, vector<1x8x64xf32>,
    return
  }
  func.func @transform_0(%arg0: i32, %arg1: i32) -> (i32, i32, i32, i32) {
    %c0_i32 = arith.constant 0 : i32
    %c0_i32_0 = arith.constant 0 : i32
    %c0_i32_1 = arith.constant 0 : i32
    return %arg0, %c0_i32, %arg1, %c0_i32_0 : i32, i32, i32, i32
  }
  func.func @transform_1(%arg0: i32, %arg1: i32) -> (i32, i32, i32) {
    %c0_i32 = arith.constant 0 : i32
    %c0_i32_0 = arith.constant 0 : i32
    return %arg0, %arg1, %c0_i32 : i32, i32, i32
  }
}

</mosaic_0001>

<bundles_post_ra>
// kernel: tpu_custom_call.1
= control target key start
LH: loop header
LB: loop body
LE: loop exit
PB: predicated region body
PF: predicated region fallthrough
CT: control target
= control target key end

     0   :  { %6 = vsyncpa [#allocation3], 0  ;;  %s2235_s0 = inlined_call_operand.hbm [shape: f32[2,4,16,16], index: 0, kind: input, shape index: {}]   ;;  %s2236_s1 = inlined_call_operand.hbm [shape: f32[2,16,64], index: 1, kind: output, shape index: {}]  }
   0x1   :  { %8 = vsyncpa [#allocation3 + $0x1], 0 }
   0x2   :  { %9 = vsyncpa [#allocation4], 0 }
   0x3   :  { %11 = vsyncpa [#allocation4 + $0x1], 0  ;;  %s1828_s6 = smov 0   ;;  %s1830_s7 = smov 0  }
   0x4   :  { %s1832_s8 = smov 0   ;;  %s1834_s9 = smov 0  }
   0x5   :  { %s1836_s10 = smov 0   ;;  %s1838_s11 = smov 0  }
   0x6   :  { %s1840_s12 = smov 0   ;;  %s1842_s13 = smov 0  }
   0x7 LB: > { %s1554_s14 = sadd.s32 4294967295, %s1796_s13   ;;  %s1555_s15 = sadd.s32 4294967294, %s1796_s13   ;;  %s1796_s13 = sphi %s1842_s13, %s17_s13   ;;  %s1792_s12 = sphi %s1840_s12, %s2250_s12   ;;  %s1788_s11 = sphi %s1838_s11, %s2249_s11   ;;  %s1784_s10 = sphi %s1836_s10, %s2248_s10   ;;  %s1780_s9 = sphi %s1834_s9, %s2247_s9   ;;  %s1776_s8 = sphi %s1832_s8, %s2246_s8   ;;  %s1772_s7 = sphi %s1830_s7, %s2245_s7   ;;  %s1768_s6 = sphi %s1828_s6, %s2244_s6  }
   0x8   : > { %s26_s16 = sadd.s32 1, %s1788_s11  ;;  %s29_s17 = sadd.s32 1, %s1792_s12 }
   0x9   : > { %p27_p0 = scmp.ge.s32.totalorder %s26_s16, 2  ;;  %s38_s18 = sadd.s32 1, %s1776_s8 }
   0xa   : > { %p45_p1 = scmp.ne.s32.totalorder %s1776_s8, %s1772_s7  ;;  %p46_p2 = scmp.eq.s32.totalorder %s1796_s13, 0 }
   0xb   : > { %s2252_s16 = smov (%p27_p0, %s26_s16), 0  ;;  %s2254_s17 = smov (!%p27_p0, %s29_s17), %s1792_s12 }
   0xc   : > { %s34_s19 = ssub.s32 %s1788_s11, %s2252_s16  ;;  %p1881_p3 = por %p46_p2, %p45_p1 }
   0xd   : > { %p31_p4 = scmp.ge.s32.totalorder %s2254_s17, 2  ;;  %p51_p5 = scmp.ne.s32.totalorder %s1772_s7, %s1768_s6 }
   0xe   : > { %p52_p6 = scmp.eq.s32.totalorder %s1554_s14, 0  ;;  %p77_p7 = scmp.eq.s32.totalorder %s1554_s14, 3 }
   0xf   : > { %s2256_s17 = smov (%p31_p4, %s2254_s17), 0  ;;  %p83_p10 = scmp.eq.s32.totalorder %s1555_s15, 3 }
  0x10   : > { %2239 = sst [smem:[#allocation8_spill]] %s2256_s17  ;;  %p1889_p8 = por %p52_p6, %p51_p5 }
  0x11   : > { %p1893_p9 = por %p77_p7, %p45_p1  ;;  %s33_s23 = ssub.s32 %s1792_s12, %s2256_s17 }
  0x12   : > { %s35_s24 = sor.u32 %s34_s19, %s33_s23  ;;  %p1899_p12 = por %p83_p10, %p51_p5 }
  0x13   : > { %p36_p11 = scmp.eq.s32.totalorder %s35_s24, 0  ;;  %p1581_p13 = scmp.lt.s32.totalorder %s1796_s13, 4 }
  0x14   : > { %s103_s26 = sand.u32 1, %s1776_s8   ;;  %s1559_s29 = sshll.u32 %s1792_s12, 3 }
  0x15   : > { %s1906_s27 = scalar_select %p36_p11, %s1776_s8, %s38_s18  }
  0x16   : > { %s1558_s28 = sshll.u32 %s103_s26, 5  ;;  %s111_s30 = sadd.s32 %s1788_s11, %s1559_s29 }
  0x17   : > { %s107_s2 = scalar_lea.vmem [#allocation2], %s1558_s28  ;;  %s1560_s4 = sshll.u32 %s111_s30, 3 }
  0x18   : > { %s116_s3 = sshll.u32 %s107_s2, 4  ;;  %s113_s15 = scalar_lea.hbm %s2235_s0, %s1560_s4  ;;  %s117_s3 = int_to_ptr.vmem [resolvable:$true] %s116_s3 }
  0x19   : > { %p1574_p0 = pnand %p1581_p13, %p1881_p3  ;;  %s114_s19 = sshll.u32 %s113_s15, 4  ;;  %s115_s19 = int_to_ptr.hbm [resolvable:$true] %s114_s19 }
  0x1a   : > { %s104_s23 = scalar_lea.sflag [#allocation3], %s103_s26  ;;  %s1798_s18 = smov 256  }
  0x1b   : > { %s1799_s24 = smov 128   ;;  %s1800_s17 = smov 8  }
  0x1c   : > { %1576 = dma.hbm_to_vmem [thread:$0]  (!%p1574_p0), %s115_s19, 512, %s117_s3, %s104_s23, %s1798_s18, %s1799_s24, %s1800_s17  }
  0x1d   : > { %p1561_p1 = scmp.ge.s32.totalorder %s1796_s13, 1  ;;  %p124_p2 = scmp.lt.s32.totalorder %s1796_s13, 5 }
  0x1f   : > { %p125_p4 = pnand %p1561_p1, %p124_p2 }
  0x20   : > { %s1918_s28 = sand.u32 (!%p125_p4), 1, %s1772_s7  }
  0x21   : > { %128 = sbr.rel (%p125_p4) target bundleno = 614 (0x266), region = 24  ;;  %s1562_s29 = sshll.u32 (!%p125_p4), %s1918_s28, 5 }
  0x22   : > { %s131_s20 = scalar_lea.sflag (!%p125_p4), [#allocation3], %s1918_s28  ;;  %s134_s30 = scalar_lea.vmem (!%p125_p4), [#allocation2], %s1562_s29 }
  0x26   : > { %1759 = dma.done.wait (%p1889_p8), %s131_s20, 512  }
  0x27   : > { %1761 = vsyncadd (%p1889_p8), %s131_s20, 4294966784  ;;  %v156_v0 = vld [vmem:[%s134_s30 + $0x10] sm:$0xff]  ;;  %v154_v1 = vld [vmem:[%s134_s30] sm:$0xff]  ;;  %v1801_v6 = vmov 1983009808   ;;  %vm287_vm0 = vcmask 1047556  }
  0x28   : > { %222 = vxpose.xlu1.b32.start.end [1/1] (short) (narrow) %v156_v0, 16  ;;  %158 = vxpose.xlu0.b32.start.end [1/1] (short) (narrow) %v154_v1, 16  ;;  %v157_v2 = vld [vmem:[%s134_s30 + $0x18] sm:$0xff]  ;;  %v155_v3 = vld [vmem:[%s134_s30 + $0x8] sm:$0xff]  ;;  %v292_v7 = vunpack.c.l.s4 %v1801_v6  ;;  %v1802_v14 = vmov 1934713408  }
  0x29   : > { %v316_v15 = vunpack.c.l.s4 %v1802_v14  ;;  %s1803_s17 = smov 4   ;;  %s1804_s21 = smov 12   ;;  %vm1419_vm1 = vcmask 31744   ;;  %vm1421_vm2 = vcmask 64512   ;;  %vm1423_vm3 = vcmask 97280  }
  0x2a   : > { %v1926_v11 = vunpack.c.0.s8 %v292_v7  ;;  %s1805_s26 = smov 8   ;;  %s1806_s2 = smov 24   ;;  %vm1425_vm4 = vcmask 130048   ;;  %vm1427_vm5 = vcmask 162816   ;;  %vm1429_vm6 = vcmask 195584  }
  0x2b   : > { %v1934_v25 = vunpack.c.0.s8 %v316_v15  ;;  %s1807_s3 = smov 16   ;;  %s1808_s4 = smov 36   ;;  %vm1431_vm7 = vcmask 228352   ;;  %vm1433_vm8 = vcmask 261120   ;;  %vm1435_vm9 = vcmask 293888  }
  0x2c   : > { %s1809_s5 = smov 32   ;;  %s1810_s14 = smov 20   ;;  %vm1437_vm10 = vcmask 326656   ;;  %vm1439_vm11 = vcmask 359424   ;;  %vm1441_vm12 = vcmask 392192   ;;  %vm1443_vm13 = vcmask 424960  }
  0x2d   : > { %s1811_s15 = smov 48   ;;  %s1812_s19 = smov 44   ;;  %vm1445_vm14 = vcmask 457728   ;;  %vm1447_vm15 = vcmask 490496  }
  0x2e   : > { %s1813_s23 = smov 28   ;;  %s1814_s18 = smov 60  }
  0x2f   : > { %s1815_s24 = smov 56   ;;  %s1816_s29 = smov 40  }
  0x30   : > { %s1817_s20 = smov 52   ;;  %s1565_s30 = sshll.u32 %s1784_s10, 1 }
  0x38   : > { %254 = vxpose.xlu1.b32.start.end [1/1] (short) (narrow) %v157_v2, 16  ;;  %190 = vxpose.xlu0.b32.start.end [1/1] (short) (narrow) %v155_v3, 16 }
  0xcc   : > { %v238_v4 = vpop.trf.xlu1  ;;  %v174_v5 = vpop.trf.xlu0 }
  0xcd   : > { %v286_v10 = vrot.slane %v238_v4, 4  ;;  %v289_v12 = vrot.slane %v174_v5, 4 }
  0xcf   : > { %v288_v13 = vsel %vm287_vm0, %v286_v10, %v174_v5  ;;  %v290_v16 = vsel %vm287_vm0, %v238_v4, %v289_v12 }
  0xd0   : > { %v294_v17 = vperm.slane %v288_v13, %v1926_v11  ;;  %v298_v24 = vperm.slane %v290_v16, %v1926_v11 }
  0xd2   : > { %v313_v26 = vrot.slane %v294_v17, 4  ;;  %v325_v33 = vrot.slane %v298_v24, 4 }
  0xd4   : > { %v239_v8 = vpop.trf.xlu1  ;;  %v175_v9 = vpop.trf.xlu0 }
  0xd5   : > { %v343_v32 = vrot.slane %v239_v8, 4  ;;  %v345_v35 = vrot.slane %v175_v9, 4 }
  0xd7   : > { %v344_v46 = vsel %vm287_vm0, %v343_v32, %v175_v9  ;;  %v346_v51 = vsel %vm287_vm0, %v239_v8, %v345_v35 }
  0xd8   : > { %v350_v52 = vperm.slane %v344_v46, %v1926_v11  ;;  %v354_v55 = vperm.slane %v346_v51, %v1926_v11 }
  0xda   : > { %v381_v61 = vrot.slane %v354_v55, 4  ;;  %v369_v62 = vrot.slane %v350_v52, 4 }
  0xdc   : > { %v270_v18 = vpop.trf.xlu1  ;;  %v206_v19 = vpop.trf.xlu0 }
  0xdd   : > { %v299_v20 = vrot.slane %v270_v18, 4  ;;  %v301_v21 = vrot.slane %v206_v19, 4 }
  0xdf   : > { %v300_v22 = vsel %vm287_vm0, %v299_v20, %v206_v19  ;;  %v302_v23 = vsel %vm287_vm0, %v270_v18, %v301_v21 }
  0xe0   : > { %v306_v27 = vperm.slane %v300_v22, %v1926_v11  ;;  %v310_v28 = vperm.slane %v302_v23, %v1926_v11 }
  0xe2   : > { %v311_v29 = vrot.slane %v306_v27, 4  ;;  %v323_v30 = vrot.slane %v310_v28, 4  ;;  %v314_v31 = vsel %vm287_vm0, %v306_v27, %v313_v26  ;;  %v326_v43 = vsel %vm287_vm0, %v310_v28, %v325_v33 }
  0xe3   : > { %v322_v34 = vperm.slane %v314_v31, %v1934_v25  ;;  %v334_v50 = vperm.slane %v326_v43, %v1934_v25 }
  0xe4   : > { %v271_v36 = vpop.trf.xlu1  ;;  %v207_v37 = vpop.trf.xlu0  ;;  %v324_v38 = vsel %vm287_vm0, %v323_v30, %v298_v24  ;;  %v312_v39 = vsel %vm287_vm0, %v311_v29, %v294_v17 }
  0xe5   : > { %v355_v40 = vrot.slane %v271_v36, 4  ;;  %v330_v41 = vperm.slane %v324_v38, %v1934_v25  ;;  %v318_v42 = vperm.slane %v312_v39, %v1934_v25  ;;  %v357_v44 = vrot.slane %v207_v37, 4 }
  0xe6   : > { %v337_v45 = vrot.slane %v322_v34, 4  ;;  %v341_v57 = vrot.slane %v334_v50, 4 }
  0xe7   : > { %v356_v47 = vsel %vm287_vm0, %v355_v40, %v207_v37  ;;  %527 = vxpose.xlu1.b32.start.end [1/1] (short) (narrow) %v330_v41, 8  ;;  %399 = vxpose.xlu2.b32.start.end [1/1] (short) (narrow) %v318_v42, 8  ;;  %v358_v53 = vsel %vm287_vm0, %v271_v36, %v357_v44  ;;  %v335_v6 = vrot.slane %v318_v42, 4  ;;  %v339_v13 = vrot.slane %v330_v41, 4 }
  0xe8   : > { %v362_v48 = vperm.slane %v356_v47, %v1926_v11  ;;  %v338_v49 = vsel %vm287_vm0, 0.0, %v337_v45  ;;  %v366_v59 = vperm.slane %v358_v53, %v1926_v11  ;;  %v342_v60 = vsel %vm287_vm0, 0.0, %v341_v57 }
  0xe9   : > { %495 = vxpose.xlu0.b32.start.end [1/1] (short) (narrow) %v338_v49, 8  ;;  %v336_v9 = vsel %vm287_vm0, 0.0, %v335_v6  ;;  %v340_v14 = vsel %vm287_vm0, 0.0, %v339_v13 }
  0xea   : > { %v367_v54 = vrot.slane %v362_v48, 4  ;;  %v379_v63 = vrot.slane %v366_v59, 4  ;;  %v382_v0 = vsel %vm287_vm0, %v366_v59, %v381_v61  ;;  %v370_v1 = vsel %vm287_vm0, %v362_v48, %v369_v62 }
  0xeb   : > { %v390_v2 = vperm.slane %v382_v0, %v1934_v25  ;;  %v378_v4 = vperm.slane %v370_v1, %v1934_v25 }
  0xec   : > { %v368_v56 = vsel %vm287_vm0, %v367_v54, %v350_v52  ;;  %v380_v3 = vsel %vm287_vm0, %v379_v63, %v354_v55 }
  0xed   : > { %v374_v58 = vperm.slane %v368_v56, %v1934_v25  ;;  %v386_v5 = vperm.slane %v380_v3, %v1934_v25  ;;  %v393_v7 = vrot.slane %v378_v4, 4  ;;  %v397_v17 = vrot.slane %v390_v2, 4 }
  0xef   : > { %463 = vxpose.xlu2.b32.start.end [1/1] (short) (narrow) %v322_v34, 8  ;;  %655 = vxpose.xlu1.b32.start.end [1/1] (short) (narrow) %v374_v58, 8  ;;  %v395_v8 = vrot.slane %v386_v5, 4  ;;  %v394_v10 = vsel %vm287_vm0, 0.0, %v393_v7  ;;  %v391_v15 = vrot.slane %v374_v58, 4  ;;  %v398_v18 = vsel %vm287_vm0, 0.0, %v397_v17 }
  0xf1   : > { %623 = vxpose.xlu0.b32.start.end [1/1] (short) (narrow) %v342_v60, 8  ;;  %v396_v12 = vsel %vm287_vm0, 0.0, %v395_v8  ;;  %v392_v16 = vsel %vm287_vm0, 0.0, %v391_v15 }
  0xf7   : > { %591 = vxpose.xlu2.b32.start.end [1/1] (short) (narrow) %v334_v50, 8  ;;  %847 = vxpose.xlu1.b32.start.end [1/1] (short) (narrow) %v390_v2, 8 }
  0xf9   : > { %719 = vxpose.xlu0.b32.start.end [1/1] (short) (narrow) %v378_v4, 8 }
  0xff   : > { %431 = vxpose.xlu2.b32.start.end [1/1] (short) (narrow) %v336_v9, 8  ;;  %751 = vxpose.xlu1.b32.start.end [1/1] (short) (narrow) %v394_v10, 8 }
 0x101   : > { %815 = vxpose.xlu0.b32.start.end [1/1] (short) (narrow) %v396_v12, 8 }
 0x107   : > { %559 = vxpose.xlu2.b32.start.end [1/1] (short) (narrow) %v340_v14, 8 }
 0x10f   : > { %783 = vxpose.xlu2.b32.start.end [1/1] (short) (narrow) %v386_v5, 8 }
 0x117   : > { %687 = vxpose.xlu2.b32.start.end [1/1] (short) (narrow) %v392_v16, 8 }
 0x11f   : > { %879 = vxpose.xlu2.b32.start.end [1/1] (short) (narrow) %v398_v18, 8 }
 0x180   : > { %v415_v19 = vpop.trf.xlu2 }
 0x181   : > { %v913_v29 = vrot.slane %v415_v19, 4 }
 0x188   : > { %v479_v20 = vpop.trf.xlu2 }
 0x189   : > { %v911_v23 = vrot.slane %v479_v20, 4  ;;  %v914_v33 = vsel %vm287_vm0, %v479_v20, %v913_v29 }
 0x18a   : > { %v922_v40 = vperm.slane %v914_v33, %v1926_v11 }
 0x18b   : > { %v543_v22 = vpop.trf.xlu1  ;;  %v912_v26 = vsel %vm287_vm0, %v911_v23, %v415_v19 }
 0x18c   : > { %v918_v32 = vperm.slane %v912_v26, %v1926_v11  ;;  %v937_v34 = vrot.slane %v543_v22, 4  ;;  %v973_v51 = vrot.slane %v922_v40, 4 }
 0x18d   : > { %v511_v21 = vpop.trf.xlu0 }
 0x18e   : > { %v923_v28 = vrot.slane %v511_v21, 4  ;;  %v961_v41 = vrot.slane %v918_v32, 4 }
 0x190   : > { %v607_v24 = vpop.trf.xlu2 }
 0x191   : > { %v935_v27 = vrot.slane %v607_v24, 4  ;;  %v938_v43 = vsel %vm287_vm0, %v607_v24, %v937_v34 }
 0x192   : > { %v946_v52 = vperm.slane %v938_v43, %v1926_v11 }
 0x193   : > { %v671_v30 = vpop.trf.xlu1  ;;  %v936_v36 = vsel %vm287_vm0, %v935_v27, %v543_v22 }
 0x194   : > { %v942_v44 = vperm.slane %v936_v36, %v1926_v11  ;;  %v1025_v49 = vrot.slane %v671_v30, 4  ;;  %v997_v2 = vrot.slane %v946_v52, 4 }
 0x195   : > { %v639_v31 = vpop.trf.xlu0 }
 0x196   : > { %v947_v47 = vrot.slane %v639_v31, 4  ;;  %v985_v55 = vrot.slane %v942_v44, 4 }
 0x198   : > { %v447_v35 = vpop.trf.xlu2 }
 0x199   : > { %v924_v37 = vsel %vm287_vm0, %v923_v28, %v447_v35  ;;  %v925_v38 = vrot.slane %v447_v35, 4 }
 0x19a   : > { %v930_v39 = vperm.slane %v924_v37, %v1926_v11 }
 0x19b   : > { %v926_v42 = vsel %vm287_vm0, %v511_v21, %v925_v38  ;;  %v1984_v57 = vpop.trf.xlu1 }
 0x19c   : > { %v934_v45 = vperm.slane %v926_v42, %v1926_v11  ;;  %v959_v46 = vrot.slane %v930_v39, 4  ;;  %v962_v48 = vsel %vm287_vm0, %v930_v39, %v961_v41  ;;  %v1047_v4 = vrot.slane %v1984_v57, 4 }
 0x19d   : > { %v735_v50 = vpop.trf.xlu0  ;;  %v970_v58 = vperm.slane %v962_v48, %v1934_v25 }
 0x19e   : > { %v960_v53 = vsel %vm287_vm0, %v959_v46, %v918_v32  ;;  %v971_v54 = vrot.slane %v934_v45, 4  ;;  %v974_v59 = vsel %vm287_vm0, %v934_v45, %v973_v51  ;;  %v1023_v61 = vrot.slane %v735_v50, 4 }
 0x19f   : > { %v966_v62 = vperm.slane %v960_v53, %v1934_v25  ;;  %v1026_v1 = vsel %vm287_vm0, %v735_v50, %v1025_v49  ;;  %v982_v5 = vperm.slane %v974_v59, %v1934_v25  ;;  %v1013_v16 = vrot.slane %v970_v58, 4 }
 0x1a0   : > { %v575_v56 = vpop.trf.xlu2  ;;  %v972_v3 = vsel %vm287_vm0, %v971_v54, %v922_v40  ;;  %v1024_v12 = vsel %vm287_vm0, %v1023_v61, %v671_v30  ;;  %v2001_v13 = vperm.slane %v1026_v1, %v1926_v11 }
 0x1a1   : > { %v948_v60 = vsel %vm287_vm0, %v947_v47, %v575_v56  ;;  %v949_v63 = vrot.slane %v575_v56, 4  ;;  %v978_v14 = vperm.slane %v972_v3, %v1934_v25  ;;  %v1009_v15 = vrot.slane %v966_v62, 4 }
 0x1a2   : > { %v954_v0 = vperm.slane %v948_v60, %v1926_v11  ;;  %v1021_v22 = vrot.slane %v982_v5, 4  ;;  %v1030_v27 = vperm.slane %v1024_v12, %v1926_v11 }
 0x1a3   : > { %v950_v6 = vsel %vm287_vm0, %v639_v31, %v949_v63  ;;  %v1085_v31 = vrot.slane %v2001_v13, 4  ;;  %v767_v36 = vpop.trf.xlu1  ;;  %v1017_v37 = vrot.slane %v978_v14, 4 }
 0x1a4   : > { %v983_v7 = vrot.slane %v954_v0, 4  ;;  %v986_v8 = vsel %vm287_vm0, %v954_v0, %v985_v55  ;;  %v958_v9 = vperm.slane %v950_v6, %v1926_v11  ;;  %v1035_v46 = vrot.slane %v767_v36, 4 }
 0x1a5   : > { %v994_v10 = vperm.slane %v986_v8, %v1934_v25  ;;  %v2027_v45 = vpop.trf.xlu0  ;;  %v1073_v50 = vrot.slane %v1030_v27, 4 }
 0x1a6   : > { %v984_v17 = vsel %vm287_vm0, %v983_v7, %v942_v44  ;;  %v995_v19 = vrot.slane %v958_v9, 4  ;;  %v998_v20 = vsel %vm287_vm0, %v958_v9, %v997_v2 }
 0x1a7   : > { %v990_v18 = vperm.slane %v984_v17, %v1934_v25  ;;  %v1011_v21 = vrot.slane %v994_v10, 4  ;;  %v1006_v23 = vperm.slane %v998_v20, %v1934_v25  ;;  %v2009_v24 = vsel %vm287_vm0, %v994_v10, %v1013_v16 }
 0x1a8   : > { %v799_v26 = vpop.trf.xlu2  ;;  %v996_v28 = vsel %vm287_vm0, %v995_v19, %v946_v52  ;;  %v1147_v40 = vrot.slane %v2009_v24, 4 }
 0x1a9   : > { %v1007_v29 = vrot.slane %v990_v18, 4  ;;  %v2014_v30 = vsel %vm287_vm0, %v1011_v21, %v970_v58  ;;  %v1002_v32 = vperm.slane %v996_v28, %v1934_v25  ;;  %v1019_v33 = vrot.slane %v1006_v23, 4 }
 0x1aa   : > { %v2019_v34 = vsel %vm287_vm0, %v1006_v23, %v1021_v22  ;;  %v1135_v35 = vrot.slane %v2014_v30, 4  ;;  %v1010_v39 = vsel %vm287_vm0, %v990_v18, %v1009_v15  ;;  %v1048_v43 = vsel %vm287_vm0, %v1047_v4, %v799_v26 }
 0x1ab   : > { %v1008_v38 = vsel %vm287_vm0, %v1007_v29, %v966_v62  ;;  %v1015_v41 = vrot.slane %v1002_v32, 4  ;;  %v1171_v42 = vrot.slane %v2019_v34, 4  ;;  %v1049_v44 = vrot.slane %v799_v26, 4 }
 0x1ac   : > { %v2030_v47 = vsel %vm287_vm0, %v1002_v32, %v1017_v37  ;;  %v2033_v48 = vsel %vm287_vm0, %v1019_v33, %v982_v5  ;;  %v1136_v49 = vsel %vm287_vm0, %v1135_v35, %v1008_v38  ;;  %v1148_v53 = vsel %vm287_vm0, %v1147_v40, %v1010_v39 }
 0x1ad   : > { %v2037_v51 = vsel %vm287_vm0, %v1015_v41, %v978_v14  ;;  %v1142_v52 = vperm.slane %v1136_v49, %v1926_v11  ;;  %v2042_v54 = vperm.slane %v1048_v43, %v1926_v11  ;;  %v1154_v55 = vperm.slane %v1148_v53, %v1926_v11 }
 0x1ae   : > { %v1159_v56 = vrot.slane %v2033_v48, 4  ;;  %v1061_v58 = vrot.slane %v2027_v45, 4  ;;  %v1149_v59 = vrot.slane %v1010_v39, 4  ;;  %v1050_v60 = vsel %vm287_vm0, %v1984_v57, %v1049_v44 }
 0x1af   : > { %v1172_v62 = vsel %vm287_vm0, %v1171_v42, %v2030_v47  ;;  %v1185_v63 = vrot.slane %v1142_v52, 4  ;;  %v1137_v0 = vrot.slane %v1008_v38, 4  ;;  %v1183_v7 = vrot.slane %v1154_v55, 4 }
 0x1b0   : > { %v703_v61 = vpop.trf.xlu2  ;;  %v1160_v3 = vsel %vm287_vm0, %v1159_v56, %v2037_v51  ;;  %v1178_v6 = vperm.slane %v1172_v62, %v1926_v11  ;;  %v1058_v57 = vperm.slane %v1050_v60, %v1926_v11  ;;  %v1097_v8 = vrot.slane %v2042_v54, 4 }
 0x1b1   : > { %v1036_v1 = vsel %vm287_vm0, %v1035_v46, %v703_v61  ;;  %v1037_v2 = vrot.slane %v703_v61, 4  ;;  %v1166_v5 = vperm.slane %v1160_v3, %v1926_v11  ;;  %v1186_v10 = vsel %vm287_vm0, %v1154_v55, %v1185_v63 }
 0x1b2   : > { %v1042_v4 = vperm.slane %v1036_v1, %v1926_v11  ;;  %v1184_v16 = vsel %vm287_vm0, %v1183_v7, %v1142_v52  ;;  %v1161_v17 = vrot.slane %v2037_v51, 4  ;;  %v1173_v18 = vrot.slane %v2030_v47, 4 }
 0x1b3   : > { %v1038_v9 = vsel %vm287_vm0, %v767_v36, %v1037_v2  ;;  %v2067_v19 = vperm.slane %v1184_v16, %v1934_v25  ;;  %v1207_v20 = vrot.slane %v1178_v6, 4  ;;  %v1194_v23 = vperm.slane %v1186_v10, %v1934_v25 }
 0x1b4   : > { %v1046_v12 = vperm.slane %v1038_v9, %v1926_v11  ;;  %v1071_v14 = vrot.slane %v1042_v4, 4  ;;  %v1074_v15 = vsel %vm287_vm0, %v1042_v4, %v1073_v50  ;;  %v1209_v26 = vrot.slane %v1166_v5, 4 }
 0x1b5   : > { %v1109_v28 = vrot.slane %v1058_v57, 4  ;;  %v2073_v32 = vperm.slane %v1074_v15, %v1934_v25  ;;  %v1208_v33 = vsel %vm287_vm0, %v1207_v20, %v1166_v5  ;;  %v1233_v37 = vrot.slane %v2067_v19, 4 }
 0x1b6   : > { %v1083_v21 = vrot.slane %v1046_v12, 4  ;;  %v1086_v22 = vsel %vm287_vm0, %v1046_v12, %v1085_v31  ;;  %v1072_v29 = vsel %vm287_vm0, %v1071_v14, %v1030_v27  ;;  %v2079_v36 = vperm.slane %v1208_v33, %v1934_v25 }
 0x1b7   : > { %v1210_v31 = vsel %vm287_vm0, %v1178_v6, %v1209_v26  ;;  %v1094_v39 = vperm.slane %v1086_v22, %v1934_v25  ;;  %v1138_v40 = vsel %vm287_vm0, %v2014_v30, %v1137_v0  ;;  %v1150_v41 = vsel %vm287_vm0, %v2009_v24, %v1149_v59 }
 0x1b8   : > { %v1084_v35 = vsel %vm287_vm0, %v1083_v21, %v2001_v13  ;;  %v895_v38 = vpop.trf.xlu2  ;;  %v1218_v27 = vperm.slane %v1210_v31, %v1934_v25  ;;  %v1234_v42 = vsel %vm287_vm0, %v2079_v36, %v1233_v37  ;;  %v1237_v43 = vrot.slane %v1194_v23, 4 }
 0x1b9   : > { %v1090_v13 = vperm.slane %v1084_v35, %v1934_v25  ;;  %v1059_v44 = vrot.slane %v895_v38, 4  ;;  %v1078_v46 = vperm.slane %v1072_v29, %v1934_v25  ;;  %v1125_v47 = vrot.slane %v2073_v32, 4  ;;  %1360 = vrot.lane.b32.xlu0 %v1234_v42, %s1803_s17  ;;  %s1462_s17 = sadd.s32 %s1780_s9, %s1565_s30 }
 0x1ba   : > { %v1062_v49 = vsel %vm287_vm0, %v895_v38, %v1061_v58  ;;  %v1235_v50 = vrot.slane %v1218_v27, 4  ;;  %v1238_v30 = vsel %vm287_vm0, %v1218_v27, %v1237_v43  ;;  %v1146_v52 = vperm.slane %v1138_v40, %v1926_v11 }
 0x1bb   : > { %v1060_v24 = vsel %vm287_vm0, %v1059_v44, %v2027_v45  ;;  %v1070_v51 = vperm.slane %v1062_v49, %v1926_v11  ;;  %v1133_v53 = vrot.slane %v1094_v39, 4  ;;  %1368 = vrot.lane.b32.xlu2 %v1238_v30, %s1804_s21  ;;  %v1162_v58 = vsel %vm287_vm0, %v2033_v48, %v1161_v17  ;;  %s1563_s21 = sshll.u32 %s1918_s28, 3 }
 0x1bc   : > { %v1066_v55 = vperm.slane %v1060_v24, %v1926_v11  ;;  %v1236_v56 = vsel %vm287_vm0, %v1235_v50, %v1194_v23  ;;  %v1129_v59 = vrot.slane %v1090_v13, 4  ;;  %v1170_v45 = vperm.slane %v1162_v58, %v1926_v11  ;;  %s153_s10 = scalar_lea.vmem [#allocation5], %s1563_s21 }
 0x1bd   : > { %v1107_v60 = vrot.slane %v1070_v51, 4  ;;  %v1110_v61 = vsel %vm287_vm0, %v1070_v51, %v1109_v28  ;;  %1364 = vrot.lane.b32.xlu1 %v1236_v56, %s1805_s26  ;;  %v1174_v1 = vsel %vm287_vm0, %v2019_v34, %v1173_v18  ;;  %v1158_v3 = vperm.slane %v1150_v41, %v1926_v11  ;;  %s1566_s26 = sshll.u32 %s1462_s17, 3  ;;  %s1466_s9 = sshll.u32 %s153_s10, 4  ;;  %s1467_s9 = int_to_ptr.vmem [resolvable:$true] %s1466_s9 }
 0x1be   : > { %v1095_v62 = vrot.slane %v1066_v55, 4  ;;  %v1098_v63 = vsel %vm287_vm0, %v1066_v55, %v1097_v8  ;;  %v1118_v0 = vperm.slane %v1110_v61, %v1934_v25  ;;  %v1197_v4 = vrot.slane %v1146_v52, 4 }
 0x1bf   : > { %v1106_v2 = vperm.slane %v1098_v63, %v1934_v25  ;;  %v1108_v48 = vsel %vm287_vm0, %v1107_v60, %v1058_v57  ;;  %v1221_v9 = vrot.slane %v1170_v45, 4  ;;  %v1182_v12 = vperm.slane %v1174_v1, %v1926_v11 }
 0x1c0   : > { %v1096_v5 = vsel %vm287_vm0, %v1095_v62, %v2042_v54  ;;  %v1114_v6 = vperm.slane %v1108_v48, %v1934_v25  ;;  %v1131_v7 = vrot.slane %v1118_v0, 4  ;;  %v1134_v34 = vsel %vm287_vm0, %v1118_v0, %v1133_v53 }
 0x1c1   : > { %v1102_v8 = vperm.slane %v1096_v5, %v1934_v25  ;;  %v1126_v10 = vsel %vm287_vm0, %v1106_v2, %v1125_v47  ;;  %v1123_v14 = vrot.slane %v1106_v2, 4  ;;  %v1121_v17 = vrot.slane %v1078_v46, 4 }
 0x1c2   : > { %v1127_v57 = vrot.slane %v1114_v6, 4  ;;  %v1130_v15 = vsel %vm287_vm0, %v1114_v6, %v1129_v59  ;;  %v1132_v16 = vsel %vm287_vm0, %v1131_v7, %v1094_v39  ;;  %v1195_v18 = vrot.slane %v1158_v3, 4 }
 0x1c3   : > { %v1119_v54 = vrot.slane %v1102_v8, 4  ;;  %v1259_v20 = vrot.slane %v1126_v10, 4  ;;  %v1271_v21 = vrot.slane %v1132_v16, 4  ;;  %v1198_v22 = vsel %vm287_vm0, %v1158_v3, %v1197_v4 }
 0x1c4   : > { %v1222_v23 = vsel %vm287_vm0, %v1182_v12, %v1221_v9  ;;  %v1128_v26 = vsel %vm287_vm0, %v1127_v57, %v1090_v13  ;;  %v1283_v28 = vrot.slane %v1134_v34, 4  ;;  %v1285_v29 = vrot.slane %v1130_v15, 4 }
 0x1c5   : > { %v2126_v33 = vperm.slane %v1222_v23, %v1934_v25  ;;  %v1219_v35 = vrot.slane %v1182_v12, 4  ;;  %v1120_v37 = vsel %vm287_vm0, %v1119_v54, %v1078_v46  ;;  %v1122_v31 = vsel %vm287_vm0, %v1102_v8, %v1121_v17 }
 0x1c6   : > { %v1124_v38 = vsel %vm287_vm0, %v1123_v14, %v2073_v32  ;;  %v2133_v39 = vperm.slane %v1198_v22, %v1934_v25  ;;  %v1196_v40 = vsel %vm287_vm0, %v1195_v18, %v1146_v52  ;;  %v1249_v42 = vrot.slane %v1120_v37, 4 }
 0x1c7   : > { %v1243_v27 = vrot.slane %v2126_v33, 4  ;;  %v1247_v41 = vrot.slane %v1124_v38, 4  ;;  %v1220_v13 = vsel %vm287_vm0, %v1219_v35, %v1170_v45  ;;  %v1260_v43 = vsel %vm287_vm0, %v1259_v20, %v1122_v31 }
 0x1c8   : > { %v1272_v44 = vsel %vm287_vm0, %v1271_v21, %v1128_v26  ;;  %v1226_v32 = vperm.slane %v1220_v13, %v1934_v25  ;;  %v1266_v49 = vperm.slane %v1260_v43, %v1926_v11  ;;  %v1202_v50 = vperm.slane %v1196_v40, %v1934_v25 }
 0x1c9   : > { %v1244_v46 = vsel %vm287_vm0, %v1243_v27, %v2133_v39  ;;  %v1248_v47 = vsel %vm287_vm0, %v1247_v41, %v1120_v37  ;;  %v1261_v24 = vrot.slane %v1122_v31, 4  ;;  %v1284_v51 = vsel %vm287_vm0, %v1283_v28, %v1130_v15 }
 0x1ca   : > { %1380 = vrot.lane.b32.xlu2 %v1244_v46, %s1806_s2  ;;  %v1254_v30 = vperm.slane %v1248_v47, %v1926_v11  ;;  %v1239_v52 = vrot.slane %v1226_v32, 4  ;;  %v1278_v53 = vperm.slane %v1272_v44, %v1926_v11  ;;  %v1290_v55 = vperm.slane %v1284_v51, %v1926_v11 }
 0x1cb   : > { %v1295_v56 = vrot.slane %v1266_v49, 4  ;;  %v1273_v58 = vrot.slane %v1128_v26, 4  ;;  %v1286_v59 = vsel %vm287_vm0, %v1134_v34, %v1285_v29  ;;  %v1250_v60 = vsel %vm287_vm0, %v1124_v38, %v1249_v42 }
 0x1cc   : > { %v1240_v61 = vsel %vm287_vm0, %v1239_v52, %v1202_v50  ;;  %v1319_v62 = vrot.slane %v1290_v55, 4  ;;  %v1297_v63 = vrot.slane %v1254_v30, 4  ;;  %v1262_v1 = vsel %vm287_vm0, %v1126_v10, %v1261_v24 }
 0x1cd   : > { %v1296_v45 = vsel %vm287_vm0, %v1295_v56, %v1254_v30  ;;  %1372 = vrot.lane.b32.xlu1 %v1240_v61, %s1807_s3  ;;  %v1231_v2 = vrot.slane %v2079_v36, 4  ;;  %v1258_v3 = vperm.slane %v1250_v60, %v1926_v11  ;;  %v1270_v4 = vperm.slane %v1262_v1, %v1926_v11 }
 0x1ce   : > { %v1302_v0 = vperm.slane %v1296_v45, %v1934_v25  ;;  %v1320_v48 = vsel %vm287_vm0, %v1319_v62, %v1278_v53  ;;  %v1274_v7 = vsel %vm287_vm0, %v1132_v16, %v1273_v58  ;;  %v1294_v9 = vperm.slane %v1286_v59, %v1926_v11 }
 0x1cf   : > { %v1326_v5 = vperm.slane %v1320_v48, %v1934_v25  ;;  %v1241_v8 = vrot.slane %v1202_v50, 4  ;;  %v1298_v34 = vsel %vm287_vm0, %v1266_v49, %v1297_v63  ;;  %v1282_v10 = vperm.slane %v1274_v7, %v1926_v11 }
 0x1d0   : > { %v1345_v6 = vrot.slane %v1302_v0, 4  ;;  %v1307_v12 = vrot.slane %v1270_v4, 4  ;;  %v1331_v57 = vrot.slane %v1294_v9, 4  ;;  %v1321_v15 = vrot.slane %v1278_v53, 4 }
 0x1d1   : > { %v1343_v36 = vrot.slane %v1326_v5, 4  ;;  %v1309_v54 = vrot.slane %v1258_v3, 4  ;;  %v1306_v18 = vperm.slane %v1298_v34, %v1934_v25  ;;  %v1242_v21 = vsel %vm287_vm0, %v1226_v32, %v1241_v8 }
 0x1d2   : > { %v1346_v14 = vsel %vm287_vm0, %v1326_v5, %v1345_v6  ;;  %v1308_v17 = vsel %vm287_vm0, %v1307_v12, %v1258_v3  ;;  %v1332_v20 = vsel %vm287_vm0, %v1331_v57, %v1282_v10  ;;  %v1333_v22 = vrot.slane %v1282_v10, 4 }
 0x1d3   : > { %1392 = vrot.lane.b32.xlu2 %v1346_v14, %s1808_s4  ;;  %v1344_v16 = vsel %vm287_vm0, %v1343_v36, %v1302_v0  ;;  %v1338_v11 = vperm.slane %v1332_v20, %v1934_v25  ;;  %v1232_v23 = vsel %vm287_vm0, %v1231_v2, %v2067_v19  ;;  %v1314_v26 = vperm.slane %v1308_v17, %v1934_v25  ;;  %s1464_s4 = scalar_lea.hbm %s2236_s1, %s1566_s26 }
 0x1d4   : > { %1388 = vrot.lane.b32.xlu0 %v1344_v16, %s1809_s5  ;;  %v1322_v28 = vsel %vm287_vm0, %v1290_v55, %v1321_v15  ;;  %v1310_v35 = vsel %vm287_vm0, %v1270_v4, %v1309_v54  ;;  %v1349_v37 = vrot.slane %v1306_v18, 4  ;;  %v1245_v31 = vrot.slane %v2133_v39, 4  ;;  %s1468_s5 = sshll.u32 %s1464_s4, 4  ;;  %s1469_s5 = int_to_ptr.hbm [resolvable:$true] %s1468_s5 }
 0x1d5   : > { %1376 = vrot.lane.b32.xlu1 %v1242_v21, %s1810_s14  ;;  %v1351_v29 = vrot.slane %v1338_v11, 4  ;;  %v1334_v38 = vsel %vm287_vm0, %v1294_v9, %v1333_v22  ;;  %v1330_v27 = vperm.slane %v1322_v28, %v1934_v25  ;;  %v1318_v19 = vperm.slane %v1310_v35, %v1934_v25  ;;  %s1452_s14 = scalar_lea.sflag [#allocation4], %s1918_s28 }
 0x1d6   : > { %v1342_v13 = vperm.slane %v1334_v38, %v1934_v25  ;;  %v1246_v42 = vsel %vm287_vm0, %v2126_v33, %v1245_v31  ;;  %v1353_v25 = vrot.slane %v1314_v26, 4 }
 0x1d7   : > { %v1352_v40 = vsel %vm287_vm0, %v1351_v29, %v1314_v26  ;;  %v1350_v41 = vsel %vm287_vm0, %v1330_v27, %v1349_v37  ;;  %v1357_v39 = vrot.slane %v1318_v19, 4  ;;  %v1347_v44 = vrot.slane %v1330_v27, 4 }
 0x1d8   : > { %v1355_v43 = vrot.slane %v1342_v13, 4  ;;  %v1354_v33 = vsel %vm287_vm0, %v1338_v11, %v1353_v25 }
 0x1d9   : > { %v1358_v46 = vsel %vm287_vm0, %v1342_v13, %v1357_v39  ;;  %v1348_v47 = vsel %vm287_vm0, %v1347_v44, %v1306_v18 }
 0x1da   : > { %v1356_v32 = vsel %vm287_vm0, %v1355_v43, %v1318_v19  ;;  %vm1449_vm0 = vcmask 523264  }
 0x1db   : > { %1404 = vrot.lane.b32.xlu2 %v1352_v40, %s1811_s15  ;;  %s1712_s15 = sshra.s32 %s1469_s5, 4  ;;  %s1713_s15 = int_to_ptr.hbm [resolvable:$true] %s1712_s15 }
 0x1dc   : > { %1400 = vrot.lane.b32.xlu0 %v1350_v41, %s1812_s19  ;;  %s1714_s19 = scalar_lea.hbm %s1713_s15, 8  ;;  %p1719_p7 = scmp.lt.s32.totalorder %s1713_s15, %s2236_s1 }
 0x1dd   : > { %1384 = vrot.lane.b32.xlu1 %v1246_v42, %s1813_s23  ;;  %p1715_p3 = scmp.ne.s32.totalorder %s1713_s15, %s1714_s19 }
 0x1df   : > { %p1716_p5 = pnand %p1715_p3, %p1893_p9 }
 0x1e1   : > { %p1717_p6 = pneg %p1716_p5 }
 0x1e3   : > { %1416 = vrot.lane.b32.xlu2 %v1358_v46, %s1814_s18 }
 0x1e4   : > { %1412 = vrot.lane.b32.xlu0 %v1356_v32, %s1815_s24  ;;  %s1718_s24 = scalar_lea.hbm %s2236_s1, 32 }
 0x1e5   : > { %1396 = vrot.lane.b32.xlu1 %v1348_v47, %s1816_s29  ;;  %p1720_p8 = scmp.lt.s32.totalorder %s1718_s24, %s1714_s19 }
 0x1e7   : > { %p1721_p10 = por %p1720_p8, %p1719_p7 }
 0x1e9   : > { %p1722_p11 = pnand %p1721_p10, %p1717_p6 }
 0x1ed   : > { %1408 = vrot.lane.b32.xlu1 %v1354_v33, %s1817_s20 }
 0x215   : > { %v1369_v50 = vpop.permute.xlu2 %1368 }
 0x224   : > { %v1381_v51 = vpop.permute.xlu2 %1380 }
 0x22b   : > { %v1361_v24 = vpop.permute.xlu0 %1360 }
 0x22c   : > { %v1420_v53 = vsel %vm1419_vm1, %v1232_v23, %v1361_v24 }
 0x22d   : > { %v1393_v59 = vpop.permute.xlu2 %1392 }
 0x22f   : > { %v1365_v49 = vpop.permute.xlu1 %1364 }
 0x230   : > { %v1422_v55 = vsel %vm1421_vm2, %v1420_v53, %v1365_v49 }
 0x231   : > { %v1424_v56 = vsel %vm1423_vm3, %v1422_v55, %v1369_v50 }
 0x235   : > { %v1405_v2 = vpop.permute.xlu2 %1404 }
 0x23d   : > { %v1417_v34 = vpop.permute.xlu2 %1416 }
 0x23f   : > { %v1373_v30 = vpop.permute.xlu1 %1372 }
 0x240   : > { %v1426_v60 = vsel %vm1425_vm4, %v1424_v56, %v1373_v30 }
 0x246   : > { %v1389_v58 = vpop.permute.xlu0 %1388 }
 0x247   : > { %v1377_v52 = vpop.permute.xlu1 %1376 }
 0x248   : > { %v1428_v61 = vsel %vm1427_vm5, %v1426_v60, %v1377_v52 }
 0x249   : > { %v1430_v62 = vsel %vm1429_vm6, %v1428_v61, %v1381_v51 }
 0x24e   : > { %v1401_v1 = vpop.permute.xlu0 %1400 }
 0x24f   : > { %v1385_v45 = vpop.permute.xlu1 %1384 }
 0x250   : > { %v1432_v63 = vsel %vm1431_vm7, %v1430_v62, %v1385_v45 }
 0x251   : > { %v1434_v0 = vsel %vm1433_vm8, %v1432_v63, %v1389_v58 }
 0x252   : > { %v1436_v3 = vsel %vm1435_vm9, %v1434_v0, %v1393_v59 }
 0x256   : > { %v1413_v9 = vpop.permute.xlu0 %1412 }
 0x257   : > { %v1397_v48 = vpop.permute.xlu1 %1396 }
 0x258   : > { %v1438_v4 = vsel %vm1437_vm10, %v1436_v3, %v1397_v48 }
 0x259   : > { %v1440_v5 = vsel %vm1439_vm11, %v1438_v4, %v1401_v1 }
 0x25a   : > { %v1442_v7 = vsel %vm1441_vm12, %v1440_v5, %v1405_v2 }
 0x25f   : > { %v1409_v6 = vpop.permute.xlu1 %1408 }
 0x260   : > { %v1444_v8 = vsel %vm1443_vm13, %v1442_v7, %v1409_v6 }
 0x261   : > { %v1446_v10 = vsel %vm1445_vm14, %v1444_v8, %v1413_v9 }
 0x262   : > { %v1448_v12 = vsel %vm1447_vm15, %v1446_v10, %v1417_v34 }
 0x263   : > { %1450 = vst.msk [vmem:[%s153_s10] sm:$0xff] %vm1449_vm0, %v1448_v12 }
 0x264   : > { %1725 = shalt.err (!%p1722_p11)
}
 0x265   : > { %1571 = dma.vmem_to_hbm [thread:$0]  (%p1893_p9), %s1467_s9, 128, %s1469_s5, %s1452_s14  }
 0x266 PF: > { %p1582_p13 = scmp.ge.s32.totalorder %s1796_s13, 2  ;;  %s1480_s28 = sand.u32 1, %s1768_s6  }
 0x267   : > { %s1481_s30 = scalar_lea.sflag [#allocation4], %s1480_s28 }
 0x268   : > { %p1578_p0 = pnand %p1582_p13, %p1899_p12 }
 0x26a   : > { %p1579_p1 = pneg %p1578_p0 }
 0x26c   : > { %1763 = dma.done.wait (%p1579_p1), %s1481_s30, 128  }
 0x26d   : > { %1765 = vsyncadd (%p1579_p1), %s1481_s30, 4294967168  ;;  %s17_s13 = sadd.s32 1, %s1796_s13   ;;  %s2243_s22 = sld [smem:[#allocation8_spill]] }
 0x26e   : > { %p14_p2 = scmp.ge.s32.totalorder %s17_s13, 6   ;;  %s2244_s6 = smov %s1772_s7 }
 0x26f   : > { %s2245_s7 = smov %s1776_s8  ;;  %s2246_s8 = smov %s1906_s27 }
 0x270   : > { %s2247_s9 = smov %s1788_s11  ;;  %s2248_s10 = smov %s1792_s12 }
 0x271   : > { %s2249_s11 = smov %s2252_s16  ;;  %16 = sbr.rel (!%p14_p2) target bundleno = 7 (0x7), region = 69 }
 0x273   : > { %s2250_s12 = smov %s2243_s22 }
 0x276   :  { %1487 = vsyncpa [#allocation3], 1 }
 0x277   :  { %1489 = vsyncpa [#allocation3 + $0x1], 1 }
 0x278   :  { %1490 = vsyncpa [#allocation4], 1 }
 0x279   :  { %1492 = vsyncpa [#allocation4 + $0x1], 1 }

</bundles_post_ra>
